<compile_context>
chip_gen: v7x
topology: tpu7x:2x2x1
jax: 0.10.0
libtpu: 0.0.40
codegen_flags: <defaults>
</compile_context>

<pallas_src>
import functools

import jax
import jax.numpy as jnp
from jax.experimental import pallas as pl
from jax.experimental.pallas import tpu as pltpu


def _rmsnorm_kernel(x_ref, alpha_ref, o_ref, *, inv_d, eps):
    # x_ref: (row_tile, d_model), alpha_ref: (1, d_model)
    x = x_ref[...].astype(jnp.float32)                    # f32 math (v5e-safe, accurate)
    ms = jnp.sum(x * x, axis=-1, keepdims=True) * inv_d   # mean of squares, 1/d folded
    inv = jax.lax.rsqrt(ms + eps)                          # EUP rsqrt (separate slot)
    alpha = alpha_ref[...].astype(jnp.float32)             # (1, d_model) broadcast
    o_ref[...] = (alpha * inv * x).astype(o_ref.dtype)


def _sublane(dtype):
    # sublane packing: 8 rows/vreg for 4-byte, 16 for 2-byte, 32 for 1-byte dtypes
    return {4: 8, 2: 16, 1: 32}.get(jnp.dtype(dtype).itemsize, 8)


def _round_up(a, m):
    return ((a + m - 1) // m) * m


def _round_down_min(a, m):
    return max(m, (a // m) * m)


def _pick_row_tile(rows, d_model, dtype, target_block_bytes=2 * 1024 * 1024):
    """~1-4 MiB blocks: RMSNorm is HBM-bound; big tiles amortize ~0.35us/step."""
    sub = _sublane(dtype)
    itemsize = jnp.dtype(dtype).itemsize
    tile = target_block_bytes // max(1, d_model * itemsize)
    tile = _round_down_min(int(tile), sub)
    # Never larger than the (sublane-rounded) row count.
    tile = min(tile, _round_up(rows, sub))
    # Prefer >= 8 grid steps (v7x: 2 TensorCores share the grid) as long as
    # blocks stay >= 256 KiB so we don't fall off the bandwidth roofline.
    if rows >= 8 * sub:
        cap = _round_down_min(pl.cdiv(rows, 8), sub)
        if cap * d_model * itemsize >= 256 * 1024:
            tile = min(tile, cap)
    return max(tile, sub)


def rmsnorm(x, alpha, eps=1e-6, *, row_tile=None):
    """RMSNorm over the last axis of x. alpha has shape (d_model,)."""
    orig_shape = x.shape
    d_model = int(orig_shape[-1])
    rows = 1
    for v in orig_shape[:-1]:
        rows *= int(v)

    x2d = x.reshape(rows, d_model)
    alpha2d = alpha.reshape(1, d_model)

    if row_tile is None:
        row_tile = _pick_row_tile(rows, d_model, x.dtype)

    # cdiv grid; the (possibly partial) last block is handled by Pallas:
    # stores past `rows` are masked, and every real row is fully in-bounds,
    # so no explicit zero-padding (and no extra HBM copy) is needed.
    grid = (int(pl.cdiv(rows, row_tile)),)

    itemsize = jnp.dtype(x.dtype).itemsize
    cost = pl.CostEstimate(
        flops=4 * rows * d_model,                    # square, sum, 2 muls (approx.)
        transcendentals=rows,                        # one rsqrt per row
        bytes_accessed=2 * rows * d_model * itemsize + d_model * itemsize,
    )

    # NOTE: d_model that is a multiple of 128 gives lane-dense (unmasked) stores;
    # other widths still run correctly but use masked vst.
    return pl.pallas_call(
        functools.partial(_rmsnorm_kernel, inv_d=1.0 / d_model, eps=float(eps)),
        out_shape=jax.ShapeDtypeStruct((rows, d_model), x.dtype),
        grid_spec=pltpu.PrefetchScalarGridSpec(
            num_scalar_prefetch=0,
            grid=grid,
            in_specs=[
                pl.BlockSpec((row_tile, d_model), lambda i: (i, 0)),
                pl.BlockSpec((1, d_model), lambda i: (0, 0)),  # constant block -> no re-DMA
            ],
            out_specs=pl.BlockSpec((row_tile, d_model), lambda i: (i, 0)),
        ),
        compiler_params=pltpu.CompilerParams(
            dimension_semantics=("parallel",),
            # Headroom over double-buffered ~2 MiB in/out blocks + f32 temps;
            # 48 MiB fits every generation (v7x physical VMEM is 64 MiB).
            vmem_limit_bytes=48 * 1024 * 1024,
        ),
        cost_estimate=cost,
    )(x2d, alpha2d).reshape(orig_shape)


if __name__ == "__main__":
    eps = 1e-6
    d_model = 128  # multiple of 128 -> lane-dense output stores

    # Deterministic parameter init matching nn.Parameter(torch.ones(d_model)).
    alpha = jnp.ones((d_model,), dtype=jnp.float32)

    # Case 1: f32, rows divisible by the auto row_tile.
    x = jax.random.normal(jax.random.PRNGKey(0), (2, 8, d_model), dtype=jnp.float32)
    y = jax.block_until_ready(rmsnorm(x, alpha, eps))
    ref = alpha * jax.lax.rsqrt(jnp.mean(jnp.square(x), axis=-1, keepdims=True) + eps) * x
    assert jnp.allclose(y, ref, atol=1e-5, rtol=1e-5), "f32 mismatch vs reference"

    # Case 2: rows (15) not a multiple of the tile (8) -> exercises the
    # boundary (masked) block path with no explicit padding.
    x2 = jax.random.normal(jax.random.PRNGKey(1), (3, 5, d_model), dtype=jnp.float32)
    y2 = jax.block_until_ready(rmsnorm(x2, alpha, eps, row_tile=8))
    ref2 = alpha * jax.lax.rsqrt(jnp.mean(jnp.square(x2), axis=-1, keepdims=True) + eps) * x2
    assert jnp.allclose(y2, ref2, atol=1e-5, rtol=1e-5), "boundary-tile mismatch vs reference"

    # Case 3: bf16 input -> 16-row sublane tiling, f32 internal math.
    xb = jax.random.normal(jax.random.PRNGKey(2), (2, 8, d_model), dtype=jnp.bfloat16)
    yb = jax.block_until_ready(rmsnorm(xb, alpha, eps))
    xbf = xb.astype(jnp.float32)
    refb = (alpha * jax.lax.rsqrt(jnp.mean(jnp.square(xbf), axis=-1, keepdims=True) + eps) * xbf)
    assert jnp.allclose(yb.astype(jnp.float32), refb.astype(jnp.bfloat16).astype(jnp.float32),
                        atol=2e-2, rtol=2e-2), "bf16 mismatch vs reference"

    print("KERNEL_OK")
</pallas_src>

<mosaic_0001>
module attributes {stable_mosaic.version = 11 : i64} {
  func.func @_rmsnorm_kernel(%arg0: i32, %arg1: memref<16x128xf32, #tpu.memory_space<vmem>>, %arg2: memref<1x128xf32, #tpu.memory_space<vmem>>, %arg3: memref<16x128xf32, #tpu.memory_space<vmem>>) attributes {dimension_semantics = [#tpu.dimension_semantics<parallel>], iteration_bounds = array<i64: 1>, scalar_prefetch = 0 : i64, scratch_operands = 0 : i64, tpu.core_type = #tpu.core_type<tc>, window_params = [{transform_indices = @transform_0, window_bounds = array<i64: 16, 128>}, {pipeline_mode = #tpu.pipeline_mode<synchronous>, transform_indices = @transform_1, window_bounds = array<i64: 1, 128>}, {transform_indices = @transform_2, window_bounds = array<i64: 16, 128>}]} {
    %c0 = arith.constant 0 : index
    %c0_0 = arith.constant 0 : index
    %0 = vector.load %arg1[%c0, %c0_0] : memref<16x128xf32, #tpu.memory_space<vmem>>, vector<16x128xf32>
    %1 = arith.mulf %0, %0 : vector<16x128xf32>
    %cst = arith.constant dense<0.000000e+00> : vector<16xf32>
    %2 = vector.multi_reduction <add>, %1, %cst [1] : vector<16x128xf32> to vector<16xf32>
    %3 = vector.shape_cast %2 : vector<16xf32> to vector<16x1xf32>
    %cst_1 = arith.constant 7.812500e-03 : f32
    %4 = vector.broadcast %cst_1 : f32 to vector<16x1xf32>
    %5 = arith.mulf %3, %4 : vector<16x1xf32>
    %cst_2 = arith.constant 9.99999997E-7 : f32
    %6 = vector.broadcast %cst_2 : f32 to vector<16x1xf32>
    %7 = arith.addf %5, %6 : vector<16x1xf32>
    %8 = math.rsqrt %7 : vector<16x1xf32>
    %c0_3 = arith.constant 0 : index
    %c0_4 = arith.constant 0 : index
    %9 = vector.load %arg2[%c0_3, %c0_4] : memref<1x128xf32, #tpu.memory_space<vmem>>, vector<1x128xf32>
    %10 = vector.broadcast %9 : vector<1x128xf32> to vector<16x128xf32>
    %11 = vector.broadcast %8 : vector<16x1xf32> to vector<16x128xf32>
    %12 = arith.mulf %10, %11 : vector<16x128xf32>
    %13 = arith.mulf %12, %0 : vector<16x128xf32>
    %c0_5 = arith.constant 0 : index
    %c0_6 = arith.constant 0 : index
    %14 = vector.load %arg3[%c0_5, %c0_6] : memref<16x128xf32, #tpu.memory_space<vmem>>, vector<16x128xf32>
    tpu.vector_store %arg3[%c0_5, %c0_6], %13 {strides = array<i32>} : memref<16x128xf32, #tpu.memory_space<vmem>>, vector<16x128xf32>,
    return
  }
  func.func @transform_0(%arg0: i32) -> (i32, i32) {
    %c0_i32 = arith.constant 0 : i32
    %c0_i32_0 = arith.constant 0 : i32
    return %arg0, %c0_i32 : i32, i32
  }
  func.func @transform_1(%arg0: i32) -> (i32, i32) {
    %c0_i32 = arith.constant 0 : i32
    %c0_i32_0 = arith.constant 0 : i32
    %c0_i32_1 = arith.constant 0 : i32
    return %c0_i32, %c0_i32_0 : i32, i32
  }
  func.func @transform_2(%arg0: i32) -> (i32, i32) {
    %c0_i32 = arith.constant 0 : i32
    %c0_i32_0 = arith.constant 0 : i32
    return %arg0, %c0_i32 : i32, i32
  }
}

</mosaic_0001>

<bundles_post_ra>
// kernel: tpu_custom_call.1
= control target key start
LH: loop header
LB: loop body
LE: loop exit
PB: predicated region body
PF: predicated region fallthrough
CT: control target
= control target key end

     0   :  { %7 = vsyncpa [#allocation3], 0  ;;  %s179_s0 = inlined_call_operand.hbm [shape: f32[16,128], index: 0, kind: input, shape index: {}]   ;;  %s180_s1 = inlined_call_operand.vmem [shape: f32[1,128], index: 1, kind: input, shape index: {}]   ;;  %s181_s2 = inlined_call_operand.hbm [shape: f32[16,128], index: 2, kind: output, shape index: {}]  }
   0x1   :  { %8 = vsyncpa [#allocation4], 0  ;;  %s127_s9 = smov [#allocation2]   ;;  %s79_s13 = scalar_lea.hbm %s179_s0, 256 }
   0x2   :  { %s14_s10 = sshll.u32 %s127_s9, 4  ;;  %p80_p0 = scmp.ne.s32.totalorder %s179_s0, %s79_s13  ;;  %s15_s10 = int_to_ptr.vmem [resolvable:$true] %s14_s10 }
   0x3   :  { %p83_p1 = scmp.lt.u32.totalorder %s79_s13, %s179_s0 }
   0x5   :  { %p85_p2 = pnand %p83_p1, %p80_p0 }
   0x7   :  { %88 = shalt.err (!%p85_p2)
}
   0x8   :  { %s89_s18 = scalar_lea.vmem %s15_s10, 256  ;;  %p94_p4 = scmp.lt.s32.totalorder %s15_s10, %s15_s10 }
   0x9   :  { %p90_p3 = scmp.ne.s32.totalorder %s15_s10, %s89_s18  ;;  %p95_p5 = scmp.lt.s32.totalorder %s89_s18, %s89_s18 }
   0xb   :  { %p96_p6 = por %p95_p5, %p94_p4 }
   0xd   :  { %p97_p7 = pnand %p96_p6, %p90_p3 }
   0xf   :  { %100 = shalt.err (!%p97_p7)
}
  0x10   :  { %s128_s19 = smov 128   ;;  %s129_s20 = smov 8  }
  0x11   :  { %20 = dma.hbm_to_vmem [thread:$0]  %s179_s0, 256, %s15_s10, [#allocation3], %s128_s19, %s128_s19, %s129_s20  }
  0x12   :  { %123 = dma.done.wait [#allocation3], 256  }
  0x13   :  { %124 = vsyncadd [#allocation3], 4294967040  ;;  %v26_v0 = vld [vmem:[#allocation2] sm:$0xff]  ;;  %v27_v1 = vld [vmem:[#allocation2 + $0x8] sm:$0xff]  ;;  %s130_s0 = smov [#allocation5]  }
  0x14   :  { %v28_v2 = vmul.f32 %v26_v0, %v26_v0  ;;  %v29_v3 = vmul.f32 %v27_v1, %v27_v1  ;;  %v70_v10 = vld [vmem:[%s180_s1] ss:$0 sm:$0xff]  ;;  %s58_s25 = sshll.u32 %s130_s0, 4  ;;  %s59_s25 = int_to_ptr.vmem [resolvable:$true] %s58_s25 }
  0x15   :  { %s101_s26 = scalar_lea.vmem %s59_s25, 256  ;;  %p106_p9 = scmp.lt.s32.totalorder %s59_s25, %s59_s25 }
  0x16   :  { %30 = vadd.xlane.f32.xlu0 %v28_v2  ;;  %p102_p8 = scmp.ne.s32.totalorder %s59_s25, %s101_s26  ;;  %p107_p10 = scmp.lt.s32.totalorder %s101_s26, %s101_s26 }
  0x18   :  { %p108_p11 = por %p107_p10, %p106_p9 }
  0x1a   :  { %32 = vadd.xlane.f32.xlu0 %v29_v3  ;;  %p109_p12 = pnand %p108_p11, %p102_p8 }
  0xa3   :  { %v31_v4 = vpop.xlane.xlu0 %30 }
  0xa4   :  { %v34_v5 = vmul.f32 0.0078125, %v31_v4 }
  0xa6   :  { %v36_v6 = vadd.f32 1e-06, %v34_v5 }
  0xa7   :  { %v33_v7 = vpop.xlane.xlu0 %32 }
  0xa8   :  { %75 = vrsqrt.f32 %v36_v6  ;;  %v35_v8 = vmul.f32 0.0078125, %v33_v7 }
  0xaa   :  { %v37_v9 = vadd.f32 1e-06, %v35_v8 }
  0xac   :  { %77 = vrsqrt.f32 %v37_v9 }
  0xb2   :  { %v76_v11 = vpop.eup %75 }
  0xb3   :  { %v47_v12 = vmul.f32 %v76_v11, %v70_v10 }
  0xb5   :  { %v49_v13 = vmul.f32 %v47_v12, %v26_v0 }
  0xb6   :  { %v78_v14 = vpop.eup %77 }
  0xb7   :  { %v48_v15 = vmul.f32 %v78_v14, %v70_v10  ;;  %51 = vst [vmem:[#allocation5] sm:$0xff] %v49_v13 }
  0xb9   :  { %v50_v16 = vmul.f32 %v48_v15, %v27_v1 }
  0xbb   :  { %52 = vst [vmem:[#allocation5 + $0x8] sm:$0xff] %v50_v16 }
  0xbc   :  { %112 = shalt.err (!%p109_p12)
}
  0xbd   :  { %s113_s28 = scalar_lea.hbm %s181_s2, 256 }
  0xbe   :  { %p114_p13 = scmp.ne.s32.totalorder %s181_s2, %s113_s28  ;;  %p117_p0 = scmp.lt.u32.totalorder %s113_s28, %s181_s2 }
  0xc0   :  { %p119_p1 = pnand %p117_p0, %p114_p13 }
  0xc2   :  { %122 = shalt.err (!%p119_p1)
}
  0xc3   :  { %64 = dma.vmem_to_hbm [thread:$0]  %s59_s25, 256, %s181_s2, [#allocation4], %s128_s19, %s128_s19, %s129_s20  }
  0xc4   :  { %125 = dma.done.wait [#allocation4], 256  }
  0xc5   :  { %126 = vsyncadd [#allocation4], 4294967040 }
  0xc6   :  { %68 = vsyncpa [#allocation3], 1 }
  0xc7   :  { %69 = vsyncpa [#allocation4], 1 }

</bundles_post_ra>
